<compile_context>
chip_gen: v6e
topology: v6e:2x2x1
jax: 0.10.0
libtpu: 0.0.40
codegen_flags: <defaults>
</compile_context>

<pallas_src>
import functools

import jax
import jax.numpy as jnp
from jax.experimental import pallas as pl
from jax.experimental.pallas import tpu as pltpu

_VMEM_LIMIT = 48 * 1024 * 1024   # fits v7x (64 MiB/TC) with headroom; fine on v5e/v6e


def _round_up(x, m):
    return (x + m - 1) // m * m


# ----------------------------------------------------------------------------
# Parameter folding: BN (eval mode) scale folded into the conv weights (bf16),
# bias kept in f32.
# ----------------------------------------------------------------------------
def _fold_bn(gamma, beta, mean, var, eps=1e-3):
    s = gamma * jax.lax.rsqrt(var + eps)
    b = beta - mean * s
    return s, b


def _prepare_params(params, eps=1e-3):
    s1, b1 = _fold_bn(*params["bn1"], eps)
    s2, b2 = _fold_bn(*params["bn2"], eps)
    w1 = (params["w1"] * s1[None, :]).astype(jnp.bfloat16)
    w2 = (params["w2"] * s2[None, :]).astype(jnp.bfloat16)
    return w1, b1.astype(jnp.float32), w2, b2.astype(jnp.float32)


# ----------------------------------------------------------------------------
# Kernel 1: fused 1x1 conv (matmul, BN scale pre-folded into weight) + bias + SiLU
# ----------------------------------------------------------------------------
def _pw_conv_bias_silu_kernel(x_ref, w_ref, b_ref, o_ref):
    # x_ref: (TM, Cin) f32   w_ref: (Cin, Cout) bf16   b_ref: (1, Cout) f32
    xb = x_ref[...].astype(jnp.bfloat16)               # bf16 MXU operands
    z = jnp.dot(xb, w_ref[...], preferred_element_type=jnp.float32)
    z = z + b_ref[...]                                  # folded BN bias
    o_ref[...] = (z * jax.nn.sigmoid(z)).astype(o_ref.dtype)   # SiLU, bf16 out


def pointwise_conv_bias_silu(x2d, w_bf16, bias, tm=1024):
    """x2d: (M, Cin) pixel rows; w_bf16: (Cin, Cout) bf16. Returns (M, Cout) bf16."""
    M, Cin = x2d.shape
    Cout = w_bf16.shape[1]
    # Cap the tile so the grid has >=2 steps (both v7x TensorCores usable) while
    # keeping tiles large to amortize the ~600-cycle per-step overhead.
    tm = min(tm, _round_up(max(pl.cdiv(M, 2), 8), 16))
    pad = (-M) % tm
    if pad:
        x2d = jnp.pad(x2d, ((0, pad), (0, 0)))
    Mp = x2d.shape[0]

    out = pl.pallas_call(
        _pw_conv_bias_silu_kernel,
        out_shape=jax.ShapeDtypeStruct((Mp, Cout), jnp.bfloat16),
        grid_spec=pltpu.PrefetchScalarGridSpec(
            num_scalar_prefetch=0,
            grid=(Mp // tm,),
            in_specs=[
                pl.BlockSpec((tm, Cin), lambda i: (i, 0)),
                pl.BlockSpec((Cin, Cout), lambda i: (0, 0)),
                pl.BlockSpec((1, Cout), lambda i: (0, 0)),
            ],
            out_specs=pl.BlockSpec((tm, Cout), lambda i: (i, 0)),
        ),
        compiler_params=pltpu.CompilerParams(
            dimension_semantics=("parallel",),
            vmem_limit_bytes=_VMEM_LIMIT,
        ),
    )(x2d, w_bf16, bias.reshape(1, Cout))
    return out[:M]


# ----------------------------------------------------------------------------
# Kernel 2: SPPF-cascaded max-pool pyramid fused with conv2 + bias + SiLU.
# The (N,H,W,4C) concat is never materialized in HBM; the four branches are
# staged into one (HW, 4C) bf16 VMEM slab and contracted with a single MXU dot.
# ----------------------------------------------------------------------------
def _spp_pool_conv_bias_silu_kernel(x_ref, w_ref, b_ref, o_ref, hpad_ref, slab_ref,
                                    *, n_stages, base_k):
    # x_ref: (1, H, W, C) bf16          conv1 output (NHWC)
    # w_ref: ((n_stages+1)*C, Cout) bf16 conv2 weight (BN scale folded), concat
    #                                    order [x, p5, p9, p13]
    # b_ref: (1, Cout) f32              folded BN bias
    # o_ref: (1, H*W, Cout) f32
    # hpad_ref: VMEM (H + 2*(base_k//2), W, C) bf16, -inf border rows
    # slab_ref: VMEM (H*W, (n_stages+1)*C) bf16, staging for one long-K dot
    _, H, W, C = x_ref.shape
    p = base_k // 2
    dt = x_ref.dtype                      # bf16 pooling (v6e/v7x); TODO(synk): f32 on v5e
    HW = H * W

    # -inf border rows only need to be written once: scratch persists across
    # grid steps and the interior writes never touch them. (Grid axis is marked
    # "arbitrary" so this sequential-init pattern is valid on every core.)
    @pl.when(pl.program_id(0) == 0)
    def _():
        hpad_ref[0:p, :, :] = jnp.full((p, W, C), -jnp.inf, dt)
        hpad_ref[H + p:H + 2 * p, :, :] = jnp.full((p, W, C), -jnp.inf, dt)

    # Additive -inf boundary masks for the W-axis rolls (tiny; built per image).
    zero = jnp.array(0, dt)
    neg = jnp.array(-jnp.inf, dt)
    wi = jax.lax.broadcasted_iota(jnp.int32, (W, C), 0)
    w_bias = []
    for d in range(1, p + 1):
        w_bias.append((
            jnp.where(wi >= d, zero, neg),        # roll +d reads y[j-d]
            jnp.where(wi < W - d, zero, neg),     # roll -d reads y[j+d]
        ))

    def pool_base(v):
        """Square max-pool of size base_k, stride 1, -inf 'same' padding."""
        # H pass: shifted maxima along the leading axis of the padded scratch.
        hpad_ref[p:p + H, :, :] = v
        y = hpad_ref[0:H, :, :]
        for d in range(1, base_k):
            y = jnp.maximum(y, hpad_ref[d:d + H, :, :])
        # W pass: sublane rolls (XLU) + additive -inf masks (no unaligned slices).
        z = y
        for d in range(1, p + 1):
            lo, hi = w_bias[d - 1]
            z = jnp.maximum(z, pltpu.roll(y, shift=d, axis=1) + lo)
            z = jnp.maximum(z, pltpu.roll(y, shift=W - d, axis=1) + hi)
        return z

    # Stage [x, p5, p9, p13] into the slab (SPPF cascade: 3 base_k pools).
    x = x_ref[0]                                   # (H, W, C) bf16
    slab_ref[:, 0:C] = x.reshape(HW, C)
    v = x
    for i in range(n_stages):
        v = pool_base(v)
        slab_ref[:, (i + 1) * C:(i + 2) * C] = v.reshape(HW, C)

    # conv2 over the virtual concat: single long-K MXU dot, f32 accumulation.
    z = jnp.dot(slab_ref[...], w_ref[...], preferred_element_type=jnp.float32)
    z = z + b_ref[...]                             # folded BN bias
    o_ref[0, :, :] = (z * jax.nn.sigmoid(z)).astype(o_ref.dtype)   # SiLU


def spp_pool_conv2_bias_silu(y_nhwc, w2_bf16, bias, ks=(5, 9, 13)):
    """Fused SPP max-pool pyramid + 1x1 conv2 + bias + SiLU. Returns (N, H*W, Cout) f32."""
    N, H, W, C = y_nhwc.shape
    Cout = w2_bf16.shape[1]
    base = ks[0]
    # Cascade equivalence needs k_i = k0 + i*(k0-1) with odd k0 (true for 5,9,13).
    if base % 2 != 1 or any(k != base + i * (base - 1) for i, k in enumerate(ks)):
        raise NotImplementedError("kernel_size_list must form an SPPF cascade")
    if W <= base // 2:
        raise NotImplementedError("feature map too narrow for the roll-based W pass")
    n_stages = len(ks)
    assert w2_bf16.shape[0] == (n_stages + 1) * C

    kernel = functools.partial(
        _spp_pool_conv_bias_silu_kernel, n_stages=n_stages, base_k=base)

    # TODO(synk): for very large H*W*C (v7x: 64 MiB VMEM) tile spatially with a
    # (n_stages * (base//2))-row halo instead of one whole-image block per batch.
    return pl.pallas_call(
        kernel,
        out_shape=jax.ShapeDtypeStruct((N, H * W, Cout), jnp.float32),
        grid_spec=pltpu.PrefetchScalarGridSpec(
            num_scalar_prefetch=0,
            grid=(N,),
            in_specs=[
                pl.BlockSpec((1, H, W, C), lambda n: (n, 0, 0, 0)),
                pl.BlockSpec(((n_stages + 1) * C, Cout), lambda n: (0, 0)),
                pl.BlockSpec((1, Cout), lambda n: (0, 0)),
            ],
            out_specs=pl.BlockSpec((1, H * W, Cout), lambda n: (n, 0, 0)),
            scratch_shapes=[
                pltpu.VMEM((H + 2 * (base // 2), W, C), y_nhwc.dtype),
                pltpu.VMEM((H * W, (n_stages + 1) * C), y_nhwc.dtype),
            ],
        ),
        compiler_params=pltpu.CompilerParams(
            # "arbitrary": the -inf border rows of hpad_ref are written only on
            # program_id==0 and must persist sequentially across grid steps.
            dimension_semantics=("arbitrary",),
            vmem_limit_bytes=_VMEM_LIMIT,
        ),
    )(y_nhwc, w2_bf16, bias.reshape(1, Cout))


# ----------------------------------------------------------------------------
# Parameter setup (deterministic, synthetic) and full SPP forward
# ----------------------------------------------------------------------------
def init_spp_params(key, in_channels, out_channels, ks=(5, 9, 13)):
    neck = in_channels // 2
    cat_ch = neck * (len(ks) + 1)
    k1, k2, k3, k4 = jax.random.split(key, 4)

    def bn_params(key, c):
        a, b, c_, d = jax.random.split(key, 4)
        gamma = 0.5 + jax.random.uniform(a, (c,), jnp.float32)
        beta = 0.1 * jax.random.normal(b, (c,), jnp.float32)
        mean = 0.1 * jax.random.normal(c_, (c,), jnp.float32)
        var = 0.5 + jnp.abs(jax.random.normal(d, (c,), jnp.float32))
        return gamma, beta, mean, var

    return {
        # PyTorch conv weight (Cout, Cin, 1, 1) stored as matmul weight (Cin, Cout)
        "w1": 0.1 * jax.random.normal(k1, (in_channels, neck), jnp.float32),
        "bn1": bn_params(k2, neck),
        "w2": 0.1 * jax.random.normal(k3, (cat_ch, out_channels), jnp.float32),
        "bn2": bn_params(k4, out_channels),
    }


def spp_forward(x_nchw, params, ks=(5, 9, 13)):
    N, Cin, H, W = x_nchw.shape
    w1, b1, w2, b2 = _prepare_params(params)
    neck = w1.shape[1]
    Cout = w2.shape[1]

    # TODO(synk): boundary NCHW<->NHWC transposes kept only for PyTorch interface
    # parity; in an NHWC model these two extra HBM passes disappear.
    x = jnp.transpose(x_nchw, (0, 2, 3, 1))            # NCHW -> NHWC

    y = pointwise_conv_bias_silu(x.reshape(N * H * W, Cin), w1, b1)   # bf16
    y = y.reshape(N, H, W, neck)

    z = spp_pool_conv2_bias_silu(y, w2, b2, ks=ks)     # (N, H*W, Cout) f32
    z = z.reshape(N, H, W, Cout)

    return jnp.transpose(z, (0, 3, 1, 2)).astype(x_nchw.dtype)   # NHWC -> NCHW


# ----------------------------------------------------------------------------
# Pure-JAX reference. Operands are rounded through bf16 (matching the MXU
# convention) but all dots run in f32 — some non-TPU backends reject
# BF16 x BF16 = F32 dot thunks, and bf16*bf16 products are exact in f32 anyway.
# ----------------------------------------------------------------------------
def _reference_spp(x_nchw, params, ks=(5, 9, 13)):
    w1, b1, w2, b2 = _prepare_params(params)

    def conv_bias_silu(x_nhwc, w_bf16, b):
        xq = x_nhwc.astype(jnp.bfloat16).astype(jnp.float32)
        wq = w_bf16.astype(jnp.float32)
        z = jnp.einsum("nhwc,co->nhwo", xq, wq) + b
        return z * jax.nn.sigmoid(z)

    def max_pool(x, k):
        p = k // 2
        return jax.lax.reduce_window(
            x, -jnp.inf, jax.lax.max,
            window_dimensions=(1, k, k, 1),
            window_strides=(1, 1, 1, 1),
            padding=((0, 0), (p, p), (p, p), (0, 0)))

    x = jnp.transpose(x_nchw, (0, 2, 3, 1))            # NHWC
    y = conv_bias_silu(x, w1, b1)
    # conv1 output is carried as bf16 between the kernels; mimic that rounding.
    y = y.astype(jnp.bfloat16).astype(jnp.float32)
    cat = jnp.concatenate([y] + [max_pool(y, k) for k in ks], axis=-1)
    z = conv_bias_silu(cat, w2, b2)
    return jnp.transpose(z, (0, 3, 1, 2))


if __name__ == "__main__":
    key = jax.random.PRNGKey(0)
    k_in, k_par = jax.random.split(key)

    N, Cin, H, W = 2, 4, 16, 16
    Cout = 8

    x = jax.random.normal(k_in, (N, Cin, H, W), jnp.float32)
    params = init_spp_params(k_par, Cin, Cout)

    out = jax.block_until_ready(spp_forward(x, params))
    assert out.shape == (N, Cout, H, W), out.shape

    # Structural correctness check; tolerance covers bf16 operand rounding and
    # MXU-vs-f32 accumulation-order differences.
    ref = jax.block_until_ready(_reference_spp(x, params))
    err = float(jnp.max(jnp.abs(out - ref)))
    assert err < 2e-2, f"max abs error {err}"

    print("KERNEL_OK")
</pallas_src>

<mosaic_0001>
module attributes {stable_mosaic.version = 11 : i64} {
  func.func @_pw_conv_bias_silu_kernel(%arg0: i32, %arg1: memref<256x4xf32, #tpu.memory_space<vmem>>, %arg2: memref<4x2xbf16, #tpu.memory_space<vmem>>, %arg3: memref<1x2xf32, #tpu.memory_space<vmem>>, %arg4: memref<256x2xbf16, #tpu.memory_space<vmem>>) attributes {dimension_semantics = [#tpu.dimension_semantics<parallel>], iteration_bounds = array<i64: 2>, scalar_prefetch = 0 : i64, scratch_operands = 0 : i64, tpu.core_type = #tpu.core_type<tc>, window_params = [{transform_indices = @transform_0, window_bounds = array<i64: 256, 4>}, {pipeline_mode = #tpu.pipeline_mode<synchronous>, transform_indices = @transform_1, window_bounds = array<i64: 4, 2>}, {pipeline_mode = #tpu.pipeline_mode<synchronous>, transform_indices = @transform_2, window_bounds = array<i64: 1, 2>}, {transform_indices = @transform_3, window_bounds = array<i64: 256, 2>}]} {
    %c0 = arith.constant 0 : index
    %c0_0 = arith.constant 0 : index
    %0 = vector.load %arg1[%c0, %c0_0] : memref<256x4xf32, #tpu.memory_space<vmem>>, vector<256x4xf32>
    %1 = arith.truncf %0 : vector<256x4xf32> to vector<256x4xbf16>
    %c0_1 = arith.constant 0 : index
    %c0_2 = arith.constant 0 : index
    %2 = vector.load %arg2[%c0_1, %c0_2] : memref<4x2xbf16, #tpu.memory_space<vmem>>, vector<4x2xbf16>
    %cst = arith.constant dense<0.000000e+00> : vector<256x2xf32>
    %3 = tpu.matmul %1, %2, %cst {dimension_numbers = #tpu.dot_dimension_numbers<[1], [0], [0], [1], [0, 0, 1, 1], [], []>} : vector<256x4xbf16>, vector<4x2xbf16>, vector<256x2xf32> -> vector<256x2xf32>
    %c0_3 = arith.constant 0 : index
    %c0_4 = arith.constant 0 : index
    %4 = vector.load %arg3[%c0_3, %c0_4] : memref<1x2xf32, #tpu.memory_space<vmem>>, vector<1x2xf32>
    %5 = vector.broadcast %4 : vector<1x2xf32> to vector<256x2xf32>
    %6 = arith.addf %3, %5 : vector<256x2xf32>
    %7 = arith.negf %6 : vector<256x2xf32>
    %8 = math.exp %7 : vector<256x2xf32>
    %cst_5 = arith.constant 1.000000e+00 : f32
    %9 = vector.broadcast %cst_5 : f32 to vector<256x2xf32>
    %10 = arith.addf %9, %8 : vector<256x2xf32>
    %11 = arith.divf %9, %10 : vector<256x2xf32>
    %12 = arith.mulf %6, %11 : vector<256x2xf32>
    %13 = arith.truncf %12 : vector<256x2xf32> to vector<256x2xbf16>
    %c0_6 = arith.constant 0 : index
    %c0_7 = arith.constant 0 : index
    %14 = vector.load %arg4[%c0_6, %c0_7] : memref<256x2xbf16, #tpu.memory_space<vmem>>, vector<256x2xbf16>
    tpu.vector_store %arg4[%c0_6, %c0_7], %13 {strides = array<i32>} : memref<256x2xbf16, #tpu.memory_space<vmem>>, vector<256x2xbf16>,
    return
  }
  func.func @transform_0(%arg0: i32) -> (i32, i32) {
    %c0_i32 = arith.constant 0 : i32
    %c0_i32_0 = arith.constant 0 : i32
    return %arg0, %c0_i32 : i32, i32
  }
  func.func @transform_1(%arg0: i32) -> (i32, i32) {
    %c0_i32 = arith.constant 0 : i32
    %c0_i32_0 = arith.constant 0 : i32
    %c0_i32_1 = arith.constant 0 : i32
    return %c0_i32, %c0_i32_0 : i32, i32
  }
  func.func @transform_2(%arg0: i32) -> (i32, i32) {
    %c0_i32 = arith.constant 0 : i32
    %c0_i32_0 = arith.constant 0 : i32
    %c0_i32_1 = arith.constant 0 : i32
    return %c0_i32, %c0_i32_0 : i32, i32
  }
  func.func @transform_3(%arg0: i32) -> (i32, i32) {
    %c0_i32 = arith.constant 0 : i32
    %c0_i32_0 = arith.constant 0 : i32
    return %arg0, %c0_i32 : i32, i32
  }
}

</mosaic_0001>

<bundles_post_ra>
// kernel: tpu_custom_call.1
= control target key start
LH: loop header
LB: loop body
LE: loop exit
PB: predicated region body
PF: predicated region fallthrough
CT: control target
= control target key end

     0   :  { %s1229_s12 = smov 0   ;;  %s1534_s0 = inlined_call_operand.vmem [shape: f32[512,4], index: 0, kind: input, shape index: {}]   ;;  %s1535_s1 = inlined_call_operand.vmem [shape: bf16[4,2], index: 1, kind: input, shape index: {}]   ;;  %s1536_s2 = inlined_call_operand.vmem [shape: f32[1,2], index: 2, kind: input, shape index: {}]   ;;  %s1537_s3 = inlined_call_operand.vmem [shape: bf16[512,2], index: 3, kind: output, shape index: {}]  }
   0x1 LB: > { %s886_s13 = sadd.s32 4294967295, %s1207_s12   ;;  %p890_p0 = scmp.ge.s32.totalorder %s1207_s12, 1  ;;  %s1207_s12 = sphi %s1229_s12, %s13_s12  }
   0x2   : > { %p138_p1 = scmp.lt.s32.totalorder %s1207_s12, 3 }
   0x4   : > { %p139_p2 = pnand %p890_p0, %p138_p1 }
   0x5   : > { %s891_s16 = sshll.u32 (!%p139_p2), %s886_s13, 5 }
   0x6   : > { %142 = sbr.rel (%p139_p2) target bundleno = 297 (0x129), region = 32  ;;  %p163_p3 = scmp.lt.s32.totalorder (!%p139_p2), %s891_s16, 63 }
   0xb   : > { %v223_v0 = vld [vmem:[%s1535_s1] sm:$0x3]  ;;  %vm280_vm0 = vcmask 1041408   ;;  %s1539_s16 = smov (!%p163_p3, %s891_s16), 63  ;;  %vm231_vm1 = vcmask 31744   ;;  %vm797_vm2 = vcmask 11264  }
   0xc   : > { %1063 = vmatprep.subr.msk.bf16.mxu0 %vm280_vm0, %v223_v0  ;;  %1064 = vmatprep.subr.msk.bf16.mxu1 %vm280_vm0, %v223_v0  ;;  %v282_v1 = vsel %vm280_vm0, %v223_v0, 0  ;;  %s892_s17 = sshll.u32 %s1539_s16, 3  ;;  %v1299_v50 = vld [vmem:[%s1536_s2] ss:$0 sm:$0xff]  ;;  %s894_s23 = sshll.u32 %s1539_s16, 2 }
   0xd   : > { %1028 = vmatpush3.bf16.msra.mxu0 %v282_v1  ;;  %1062 = vmatpush3.bf16.msra.mxu1 %v282_v1  ;;  %s1246_s20 = scalar_lea.vmem %s1534_s0, %s892_s17  ;;  %s1410_s26 = scalar_lea.vmem %s1537_s3, %s894_s23 }
   0xe   : > { %v175_v2 = vld [vmem:[%s1246_s20] sm:$0xff]  ;;  %v176_v3 = vld [vmem:[%s1246_s20 + $0x8] sm:$0xff]  ;;  %v177_v7 = vld [vmem:[%s1246_s20 + $0x10] sm:$0xff] }
   0xf   : > { %v191_v4 = vld [vmem:[%s1246_s20 + $0x80] sm:$0xff]  ;;  %v207_v5 = vpack.c.bf16 %v176_v3, %v175_v2  ;;  %v192_v6 = vld [vmem:[%s1246_s20 + $0x88] sm:$0xff]  ;;  %v178_v8 = vld [vmem:[%s1246_s20 + $0x18] sm:$0xff] }
  0x10   : > { %v215_v9 = vpack.c.bf16 %v192_v6, %v191_v4  ;;  %v208_v10 = vpack.c.bf16 %v178_v8, %v177_v7  ;;  %v193_v11 = vld [vmem:[%s1246_s20 + $0x90] sm:$0xff]  ;;  %v194_v12 = vld [vmem:[%s1246_s20 + $0x98] sm:$0xff]  ;;  %v179_v13 = vld [vmem:[%s1246_s20 + $0x20] sm:$0xff] }
  0x11   : > { %1029 = vmatprep.mubr.msk.bf16.mxu0 %vm231_vm1, %v207_v5  ;;  %v216_v14 = vpack.c.bf16 %v194_v12, %v193_v11  ;;  %v180_v15 = vld [vmem:[%s1246_s20 + $0x28] sm:$0xff]  ;;  %v195_v16 = vld [vmem:[%s1246_s20 + $0xa0] sm:$0xff]  ;;  %v181_v20 = vld [vmem:[%s1246_s20 + $0x30] sm:$0xff] }
  0x12   : > { %v196_v17 = vld [vmem:[%s1246_s20 + $0xa8] sm:$0xff]  ;;  %1045 = vmatprep.mubr.msk.bf16.mxu1 %vm231_vm1, %v215_v9  ;;  %1030 = vmatmul.mubr.msk.bf16.vlgmr.msra.gmra.mxu0 %vm231_vm1, %v208_v10  ;;  %v209_v18 = vpack.c.bf16 %v180_v15, %v179_v13  ;;  %v182_v21 = vld [vmem:[%s1246_s20 + $0x38] sm:$0xff]  ;;  %v197_v22 = vld [vmem:[%s1246_s20 + $0xb0] sm:$0xff] }
  0x13   : > { %v217_v19 = vpack.c.bf16 %v196_v17, %v195_v16  ;;  %1046 = vmatmul.mubr.msk.bf16.vlgmr.msra.gmra.mxu1 %vm231_vm1, %v216_v14  ;;  %v198_v23 = vld [vmem:[%s1246_s20 + $0xb8] sm:$0xff]  ;;  %v183_v24 = vld [vmem:[%s1246_s20 + $0x40] sm:$0xff]  ;;  %v184_v25 = vld [vmem:[%s1246_s20 + $0x48] sm:$0xff]  ;;  %v210_v28 = vpack.c.bf16 %v182_v21, %v181_v20 }
  0x14   : > { %1033 = vmatprep.mubr.msk.bf16.mxu0 %vm231_vm1, %v209_v18  ;;  %v199_v26 = vld [vmem:[%s1246_s20 + $0xc0] sm:$0xff]  ;;  %v200_v27 = vld [vmem:[%s1246_s20 + $0xc8] sm:$0xff]  ;;  %v218_v29 = vpack.c.bf16 %v198_v23, %v197_v22  ;;  %v211_v30 = vpack.c.bf16 %v184_v25, %v183_v24  ;;  %v185_v32 = vld [vmem:[%s1246_s20 + $0x50] sm:$0xff] }
  0x15   : > { %1049 = vmatprep.mubr.msk.bf16.mxu1 %vm231_vm1, %v217_v19  ;;  %v219_v31 = vpack.c.bf16 %v200_v27, %v199_v26  ;;  %v186_v33 = vld [vmem:[%s1246_s20 + $0x58] sm:$0xff]  ;;  %v201_v34 = vld [vmem:[%s1246_s20 + $0xd0] sm:$0xff]  ;;  %v187_v36 = vld [vmem:[%s1246_s20 + $0x60] sm:$0xff] }
  0x16   : > { %v202_v35 = vld [vmem:[%s1246_s20 + $0xd8] sm:$0xff]  ;;  %v188_v37 = vld [vmem:[%s1246_s20 + $0x68] sm:$0xff]  ;;  %v203_v38 = vld [vmem:[%s1246_s20 + $0xe0] sm:$0xff]  ;;  %v212_v40 = vpack.c.bf16 %v186_v33, %v185_v32 }
  0x17   : > { %v204_v39 = vld [vmem:[%s1246_s20 + $0xe8] sm:$0xff]  ;;  %v220_v41 = vpack.c.bf16 %v202_v35, %v201_v34  ;;  %v213_v42 = vpack.c.bf16 %v188_v37, %v187_v36  ;;  %v189_v44 = vld [vmem:[%s1246_s20 + $0x70] sm:$0xff]  ;;  %v190_v45 = vld [vmem:[%s1246_s20 + $0x78] sm:$0xff] }
  0x18   : > { %v221_v43 = vpack.c.bf16 %v204_v39, %v203_v38  ;;  %v205_v46 = vld [vmem:[%s1246_s20 + $0xf0] sm:$0xff]  ;;  %v206_v47 = vld [vmem:[%s1246_s20 + $0xf8] sm:$0xff]  ;;  %v214_v48 = vpack.c.bf16 %v190_v45, %v189_v44 }
  0x19   : > { %v222_v49 = vpack.c.bf16 %v206_v47, %v205_v46 }
  0x1a   : > { %1034 = vmatmul.mubr.msk.bf16.gmra.mxu0 %vm231_vm1, %v210_v28 }
  0x1b   : > { %1050 = vmatmul.mubr.msk.bf16.gmra.mxu1 %vm231_vm1, %v218_v29  ;;  %1037 = vmatprep.mubr.msk.bf16.mxu0 %vm231_vm1, %v211_v30 }
  0x1c   : > { %1053 = vmatprep.mubr.msk.bf16.mxu1 %vm231_vm1, %v219_v31 }
  0x22   : > { %1038 = vmatmul.mubr.msk.bf16.gmra.mxu0 %vm231_vm1, %v212_v40 }
  0x23   : > { %1054 = vmatmul.mubr.msk.bf16.gmra.mxu1 %vm231_vm1, %v220_v41  ;;  %1041 = vmatprep.mubr.msk.bf16.mxu0 %vm231_vm1, %v213_v42 }
  0x24   : > { %1057 = vmatprep.mubr.msk.bf16.mxu1 %vm231_vm1, %v221_v43 }
  0x2a   : > { %1042 = vmatmul.mubr.msk.bf16.gmra.mxu0 %vm231_vm1, %v214_v48 }
  0x2b   : > { %1058 = vmatmul.mubr.msk.bf16.gmra.mxu1 %vm231_vm1, %v222_v49 }
  0xd2   : > { %v1031_v51 = vpop.f32.mrf.mxu0 }
  0xd3   : > { %v1302_v52 = vadd.f32 %v1031_v51, %v1299_v50  ;;  %v1047_v53 = vpop.f32.mrf.mxu1 }
  0xd4   : > { %v1305_v54 = vadd.f32 %v1047_v53, %v1299_v50  ;;  %v318_v55 = vpop.f32.mrf.mxu0 }
  0xd5   : > { %v914_v56 = vmul.f32 -1.442695, %v1302_v52  ;;  %v1309_v57 = vadd.f32 %v1299_v50, %v318_v55  ;;  %v382_v58 = vpop.f32.mrf.mxu1 }
  0xd6   : > { %v930_v59 = vmul.f32 -1.442695, %v1305_v54  ;;  %v1313_v60 = vadd.f32 %v1299_v50, %v382_v58  ;;  %v1032_v61 = vpop.f32.mrf.mxu0 }
  0xd7   : > { %1073 = vpow2.f32 %v914_v56  ;;  %v912_v62 = vmul.f32 -1.442695, %v1309_v57  ;;  %v1317_v63 = vadd.f32 %v1032_v61, %v1299_v50  ;;  %v1048_v0 = vpop.f32.mrf.mxu1 }
  0xd8   : > { %1075 = vpow2.f32 %v930_v59  ;;  %v928_v1 = vmul.f32 -1.442695, %v1313_v60  ;;  %v1321_v2 = vadd.f32 %v1048_v0, %v1299_v50  ;;  %v321_v3 = vpop.f32.mrf.mxu0 }
  0xd9   : > { %1077 = vpow2.f32 %v912_v62  ;;  %v915_v4 = vmul.f32 -1.442695, %v1317_v63  ;;  %v1325_v5 = vadd.f32 %v1299_v50, %v321_v3  ;;  %v385_v6 = vpop.f32.mrf.mxu1 }
  0xda   : > { %1079 = vpow2.f32 %v928_v1  ;;  %v931_v7 = vmul.f32 -1.442695, %v1321_v2  ;;  %v1329_v8 = vadd.f32 %v1299_v50, %v385_v6  ;;  %v1035_v9 = vpop.f32.mrf.mxu0 }
  0xdb   : > { %1081 = vpow2.f32 %v915_v4  ;;  %v913_v10 = vmul.f32 -1.442695, %v1325_v5  ;;  %v1333_v11 = vadd.f32 %v1035_v9, %v1299_v50  ;;  %v1051_v12 = vpop.f32.mrf.mxu1 }
  0xdc   : > { %1083 = vpow2.f32 %v931_v7  ;;  %v929_v13 = vmul.f32 -1.442695, %v1329_v8  ;;  %v1337_v14 = vadd.f32 %v1051_v12, %v1299_v50  ;;  %v334_v15 = vpop.f32.mrf.mxu0 }
  0xdd   : > { %1085 = vpow2.f32 %v913_v10  ;;  %v918_v16 = vmul.f32 -1.442695, %v1333_v11  ;;  %v1341_v17 = vadd.f32 %v1299_v50, %v334_v15  ;;  %v398_v18 = vpop.f32.mrf.mxu1 }
  0xde   : > { %1087 = vpow2.f32 %v929_v13  ;;  %v934_v19 = vmul.f32 -1.442695, %v1337_v14  ;;  %v1345_v20 = vadd.f32 %v1299_v50, %v398_v18  ;;  %v1036_v21 = vpop.f32.mrf.mxu0 }
  0xdf   : > { %1089 = vpow2.f32 %v918_v16  ;;  %v916_v22 = vmul.f32 -1.442695, %v1341_v17  ;;  %v1349_v23 = vadd.f32 %v1036_v21, %v1299_v50  ;;  %v1052_v24 = vpop.f32.mrf.mxu1 }
  0xe0   : > { %1091 = vpow2.f32 %v934_v19  ;;  %v932_v25 = vmul.f32 -1.442695, %v1345_v20  ;;  %v1353_v26 = vadd.f32 %v1052_v24, %v1299_v50  ;;  %v337_v27 = vpop.f32.mrf.mxu0 }
  0xe1   : > { %1093 = vpow2.f32 %v916_v22  ;;  %v919_v28 = vmul.f32 -1.442695, %v1349_v23  ;;  %v1357_v29 = vadd.f32 %v1299_v50, %v337_v27  ;;  %v401_v30 = vpop.f32.mrf.mxu1 }
  0xe2   : > { %1095 = vpow2.f32 %v932_v25  ;;  %v935_v31 = vmul.f32 -1.442695, %v1353_v26  ;;  %v1361_v32 = vadd.f32 %v1299_v50, %v401_v30  ;;  %v1039_v33 = vpop.f32.mrf.mxu0 }
  0xe3   : > { %1097 = vpow2.f32 %v919_v28  ;;  %v917_v34 = vmul.f32 -1.442695, %v1357_v29  ;;  %v1055_v35 = vpop.f32.mrf.mxu1  ;;  %v1366_v58 = vadd.f32 %v1039_v33, %v1299_v50 }
  0xe4   : > { %v1074_v36 = vpop.eup %1073  ;;  %1099 = vpow2.f32 %v935_v31  ;;  %v933_v37 = vmul.f32 -1.442695, %v1361_v32  ;;  %v350_v38 = vpop.f32.mrf.mxu0  ;;  %v1369_v4 = vadd.f32 %v1055_v35, %v1299_v50 }
  0xe5   : > { %v1076_v39 = vpop.eup %1075  ;;  %v543_v40 = vadd.f32 1.0, %v1074_v36  ;;  %1101 = vpow2.f32 %v917_v34  ;;  %v414_v41 = vpop.f32.mrf.mxu1  ;;  %v1372_v9 = vadd.f32 %v1299_v50, %v350_v38  ;;  %v922_v13 = vmul.f32 -1.442695, %v1366_v58 }
  0xe6   : > { %v1078_v42 = vpop.eup %1077  ;;  %v559_v43 = vadd.f32 1.0, %v1076_v39  ;;  %1103 = vpow2.f32 %v933_v37  ;;  %v1040_v44 = vpop.f32.mrf.mxu0  ;;  %v1376_v19 = vadd.f32 %v1299_v50, %v414_v41  ;;  %v938_v27 = vmul.f32 -1.442695, %v1369_v4 }
  0xe7   : > { %v1080_v45 = vpop.eup %1079  ;;  %1105 = vrcp.f32 %v543_v40  ;;  %v541_v46 = vadd.f32 1.0, %v1078_v42  ;;  %v1056_v47 = vpop.f32.mrf.mxu1  ;;  %v1379_v21 = vadd.f32 %v1040_v44, %v1299_v50  ;;  %v920_v33 = vmul.f32 -1.442695, %v1372_v9 }
  0xe8   : > { %v1082_v48 = vpop.eup %1081  ;;  %1107 = vrcp.f32 %v559_v43  ;;  %v557_v49 = vadd.f32 1.0, %v1080_v45  ;;  %v353_v59 = vpop.f32.mrf.mxu0  ;;  %v1383_v28 = vadd.f32 %v1056_v47, %v1299_v50  ;;  %v936_v42 = vmul.f32 -1.442695, %v1376_v19 }
  0xe9   : > { %v1084_v51 = vpop.eup %1083  ;;  %1109 = vrcp.f32 %v541_v46  ;;  %v544_v53 = vadd.f32 1.0, %v1082_v48  ;;  %v417_v0 = vpop.f32.mrf.mxu1  ;;  %v1387_v34 = vadd.f32 %v1299_v50, %v353_v59  ;;  %v923_v43 = vmul.f32 -1.442695, %v1379_v21 }
  0xea   : > { %v1086_v55 = vpop.eup %1085  ;;  %1111 = vrcp.f32 %v557_v49  ;;  %v560_v56 = vadd.f32 1.0, %v1084_v51  ;;  %v1043_v15 = vpop.f32.mrf.mxu0  ;;  %v1390_v37 = vadd.f32 %v1299_v50, %v417_v0  ;;  %v939_v47 = vmul.f32 -1.442695, %v1383_v28 }
  0xeb   : > { %v1088_v61 = vpop.eup %1087  ;;  %1113 = vrcp.f32 %v544_v53  ;;  %v542_v62 = vadd.f32 1.0, %v1086_v55  ;;  %v1059_v22 = vpop.f32.mrf.mxu1  ;;  %v1393_v38 = vadd.f32 %v1043_v15, %v1299_v50  ;;  %v921_v53 = vmul.f32 -1.442695, %v1387_v34 }
  0xec   : > { %v1090_v1 = vpop.eup %1089  ;;  %1115 = vrcp.f32 %v560_v56  ;;  %v558_v3 = vadd.f32 1.0, %v1088_v61  ;;  %v366_v39 = vpop.f32.mrf.mxu0  ;;  %v1400_v48 = vadd.f32 %v1059_v22, %v1299_v50  ;;  %v937_v61 = vmul.f32 -1.442695, %v1390_v37 }
  0xed   : > { %v1092_v6 = vpop.eup %1091  ;;  %1117 = vrcp.f32 %v542_v62  ;;  %v547_v7 = vadd.f32 1.0, %v1090_v1  ;;  %v430_v44 = vpop.f32.mrf.mxu1  ;;  %v1405_v55 = vadd.f32 %v1299_v50, %v366_v39 }
  0xee   : > { %v1094_v10 = vpop.eup %1093  ;;  %1119 = vrcp.f32 %v558_v3  ;;  %v563_v12 = vadd.f32 1.0, %v1092_v6  ;;  %v1044_v62 = vpop.f32.mrf.mxu0  ;;  %v1417_v6 = vadd.f32 %v1299_v50, %v430_v44  ;;  %v942_v15 = vmul.f32 -1.442695, %v1400_v48 }
  0xef   : > { %v1096_v16 = vpop.eup %1095  ;;  %1121 = vrcp.f32 %v547_v7  ;;  %v545_v18 = vadd.f32 1.0, %v1094_v10  ;;  %v1060_v7 = vpop.f32.mrf.mxu1 }
  0xf0   : > { %v1098_v24 = vpop.eup %1097  ;;  %1123 = vrcp.f32 %v563_v12  ;;  %v561_v25 = vadd.f32 1.0, %v1096_v16 }
  0xf1   : > { %v1100_v30 = vpop.eup %1099  ;;  %1125 = vrcp.f32 %v545_v18  ;;  %v548_v31 = vadd.f32 1.0, %v1098_v24 }
  0xf2   : > { %v1102_v35 = vpop.eup %1101  ;;  %1127 = vrcp.f32 %v561_v25  ;;  %v564_v36 = vadd.f32 1.0, %v1100_v30  ;;  %v1429_v25 = vadd.f32 %v1044_v62, %v1299_v50 }
  0xf3   : > { %v1104_v40 = vpop.eup %1103  ;;  %1129 = vrcp.f32 %v548_v31  ;;  %v546_v41 = vadd.f32 1.0, %v1102_v35  ;;  %v433_v35 = vpop.f32.mrf.mxu1 }
  0xf4   : > { %v1106_v45 = vpop.eup %1105  ;;  %1131 = vrcp.f32 %v564_v36  ;;  %v562_v46 = vadd.f32 1.0, %v1104_v40  ;;  %v1439_v40 = vadd.f32 %v1060_v7, %v1299_v50 }
  0xf5   : > { %v1108_v49 = vpop.eup %1107  ;;  %v639_v51 = vmul.f32 %v1106_v45, %v1302_v52  ;;  %1133 = vrcp.f32 %v546_v41  ;;  %v926_v52 = vmul.f32 -1.442695, %v1393_v38 }
  0xf6   : > { %v1110_v56 = vpop.eup %1109  ;;  %v655_v59 = vmul.f32 %v1108_v49, %v1305_v54  ;;  %1135 = vrcp.f32 %v562_v46  ;;  %v1451_v46 = vadd.f32 %v1299_v50, %v433_v35 }
  0xf7   : > { %v1112_v0 = vpop.eup %1111  ;;  %v980_v1 = vpack.c.bf16 %v639_v51, %v639_v51  ;;  %v637_v3 = vmul.f32 %v1110_v56, %v1309_v57  ;;  %1137 = vpow2.f32 %v922_v13  ;;  %v924_v13 = vmul.f32 -1.442695, %v1405_v55 }
  0xf8   : > { %v1114_v10 = vpop.eup %1113  ;;  %v996_v12 = vpack.c.bf16 %v655_v59, %v655_v59  ;;  %v653_v54 = vmul.f32 %v1112_v0, %v1313_v60  ;;  %1139 = vpow2.f32 %v938_v27  ;;  %v369_v27 = vpop.f32.mrf.mxu0  ;;  %v927_v51 = vmul.f32 -1.442695, %v1429_v25 }
  0xf9   : > { %v1116_v16 = vpop.eup %1115  ;;  %800 = vst.msk [vmem:[%s1410_s26 + $0x8] sm:$0xf] %vm797_vm2, %v980_v1  ;;  %v978_v18 = vpack.c.bf16 %v637_v3, %v637_v3  ;;  %v640_v57 = vmul.f32 %v1114_v10, %v1317_v63  ;;  %1141 = vpow2.f32 %v920_v33  ;;  %v940_v33 = vmul.f32 -1.442695, %v1417_v6 }
  0xfa   : > { %v1118_v22 = vpop.eup %1117  ;;  %816 = vst.msk [vmem:[%s1410_s26 + $0x48] sm:$0xf] %vm797_vm2, %v996_v12  ;;  %v994_v24 = vpack.c.bf16 %v653_v54, %v653_v54  ;;  %v656_v60 = vmul.f32 %v1116_v16, %v1321_v2  ;;  %1143 = vpow2.f32 %v936_v42  ;;  %v941_v1 = vmul.f32 -1.442695, %v1451_v46 }
  0xfb   : > { %v1120_v30 = vpop.eup %1119  ;;  %798 = vst.msk [vmem:[%s1410_s26] sm:$0xf] %vm797_vm2, %v978_v18  ;;  %v981_v63 = vpack.c.bf16 %v640_v57, %v640_v57  ;;  %v638_v31 = vmul.f32 %v1118_v22, %v1325_v5  ;;  %1145 = vpow2.f32 %v923_v43  ;;  %v1445_v43 = vadd.f32 %v1299_v50, %v369_v27 }
  0xfc   : > { %v1122_v36 = vpop.eup %1121  ;;  %814 = vst.msk [vmem:[%s1410_s26 + $0x40] sm:$0xf] %vm797_vm2, %v994_v24  ;;  %v997_v2 = vpack.c.bf16 %v656_v60, %v656_v60  ;;  %v654_v39 = vmul.f32 %v1120_v30, %v1329_v8  ;;  %1147 = vpow2.f32 %v939_v47  ;;  %v943_v50 = vmul.f32 -1.442695, %v1439_v40 }
  0xfd   : > { %v1124_v41 = vpop.eup %1123  ;;  %801 = vst.msk [vmem:[%s1410_s26 + $0xc] sm:$0xf] %vm797_vm2, %v981_v63  ;;  %v979_v5 = vpack.c.bf16 %v638_v31, %v638_v31  ;;  %v643_v42 = vmul.f32 %v1122_v36, %v1333_v11  ;;  %1149 = vpow2.f32 %v921_v53 }
  0xfe   : > { %v1126_v44 = vpop.eup %1125  ;;  %817 = vst.msk [vmem:[%s1410_s26 + $0x4c] sm:$0xf] %vm797_vm2, %v997_v2  ;;  %v995_v8 = vpack.c.bf16 %v654_v39, %v654_v39  ;;  %v659_v45 = vmul.f32 %v1124_v41, %v1337_v14  ;;  %1151 = vpow2.f32 %v937_v61 }
  0xff   : > { %v1128_v47 = vpop.eup %1127  ;;  %799 = vst.msk [vmem:[%s1410_s26 + $0x4] sm:$0xf] %vm797_vm2, %v979_v5  ;;  %v984_v11 = vpack.c.bf16 %v643_v42, %v643_v42  ;;  %v641_v49 = vmul.f32 %v1126_v44, %v1341_v17  ;;  %1153 = vpow2.f32 %v926_v52  ;;  %v925_v52 = vmul.f32 -1.442695, %v1445_v43 }
 0x100   : > { %v1130_v53 = vpop.eup %1129  ;;  %815 = vst.msk [vmem:[%s1410_s26 + $0x44] sm:$0xf] %vm797_vm2, %v995_v8  ;;  %v1000_v56 = vpack.c.bf16 %v659_v45, %v659_v45  ;;  %v657_v14 = vmul.f32 %v1128_v47, %v1345_v20  ;;  %1155 = vpow2.f32 %v942_v15 }
 0x101   : > { %v1132_v59 = vpop.eup %1131  ;;  %804 = vst.msk [vmem:[%s1410_s26 + $0x18] sm:$0xf] %vm797_vm2, %v984_v11  ;;  %v982_v61 = vpack.c.bf16 %v641_v49, %v641_v49  ;;  %v644_v17 = vmul.f32 %v1130_v53, %v1349_v23  ;;  %1157 = vpow2.f32 %v924_v13 }
 0x102   : > { %v1134_v62 = vpop.eup %1133  ;;  %820 = vst.msk [vmem:[%s1410_s26 + $0x58] sm:$0xf] %vm797_vm2, %v1000_v56  ;;  %v998_v0 = vpack.c.bf16 %v657_v14, %v657_v14  ;;  %v660_v20 = vmul.f32 %v1132_v59, %v1353_v26  ;;  %1159 = vpow2.f32 %v940_v33 }
 0x103   : > { %v1136_v3 = vpop.eup %1135  ;;  %802 = vst.msk [vmem:[%s1410_s26 + $0x10] sm:$0xf] %vm797_vm2, %v982_v61  ;;  %v985_v7 = vpack.c.bf16 %v644_v17, %v644_v17  ;;  %v642_v23 = vmul.f32 %v1134_v62, %v1357_v29  ;;  %1161 = vpow2.f32 %v927_v51 }
 0x104   : > { %v1138_v10 = vpop.eup %1137  ;;  %818 = vst.msk [vmem:[%s1410_s26 + $0x50] sm:$0xf] %vm797_vm2, %v998_v0  ;;  %v1001_v12 = vpack.c.bf16 %v660_v20, %v660_v20  ;;  %v658_v54 = vmul.f32 %v1136_v3, %v1361_v32  ;;  %1163 = vpow2.f32 %v943_v50 }
 0x105   : > { %v1140_v26 = vpop.eup %1139  ;;  %805 = vst.msk [vmem:[%s1410_s26 + $0x1c] sm:$0xf] %vm797_vm2, %v985_v7  ;;  %v983_v15 = vpack.c.bf16 %v642_v23, %v642_v23  ;;  %v551_v16 = vadd.f32 1.0, %v1138_v10  ;;  %1165 = vpow2.f32 %v925_v52 }
 0x106   : > { %v1142_v18 = vpop.eup %1141  ;;  %821 = vst.msk [vmem:[%s1410_s26 + $0x5c] sm:$0xf] %vm797_vm2, %v1001_v12  ;;  %v999_v29 = vpack.c.bf16 %v658_v54, %v658_v54  ;;  %v567_v57 = vadd.f32 1.0, %v1140_v26  ;;  %1167 = vpow2.f32 %v941_v1 }
 0x107   : > { %v1144_v13 = vpop.eup %1143  ;;  %803 = vst.msk [vmem:[%s1410_s26 + $0x14] sm:$0xf] %vm797_vm2, %v983_v15  ;;  %1169 = vrcp.f32 %v551_v16  ;;  %v549_v22 = vadd.f32 1.0, %v1142_v18 }
 0x108   : > { %v1146_v32 = vpop.eup %1145  ;;  %819 = vst.msk [vmem:[%s1410_s26 + $0x54] sm:$0xf] %vm797_vm2, %v999_v29  ;;  %1171 = vrcp.f32 %v567_v57  ;;  %v565_v24 = vadd.f32 1.0, %v1144_v13 }
 0x109   : > { %v1148_v60 = vpop.eup %1147  ;;  %1173 = vrcp.f32 %v549_v22  ;;  %v552_v27 = vadd.f32 1.0, %v1146_v32 }
 0x10a   : > { %v1150_v30 = vpop.eup %1149  ;;  %1175 = vrcp.f32 %v565_v24  ;;  %v568_v63 = vadd.f32 1.0, %v1148_v60 }
 0x10b   : > { %v1152_v31 = vpop.eup %1151  ;;  %1177 = vrcp.f32 %v552_v27  ;;  %v550_v33 = vadd.f32 1.0, %v1150_v30 }
 0x10c   : > { %v1154_v35 = vpop.eup %1153  ;;  %1179 = vrcp.f32 %v568_v63  ;;  %v566_v36 = vadd.f32 1.0, %v1152_v31 }
 0x10d   : > { %v1156_v2 = vpop.eup %1155  ;;  %1181 = vrcp.f32 %v550_v33  ;;  %v555_v39 = vadd.f32 1.0, %v1154_v35 }
 0x10e   : > { %v1158_v41 = vpop.eup %1157  ;;  %1183 = vrcp.f32 %v566_v36  ;;  %v571_v5 = vadd.f32 1.0, %v1156_v2 }
 0x10f   : > { %v1160_v42 = vpop.eup %1159  ;;  %1185 = vrcp.f32 %v555_v39  ;;  %v553_v44 = vadd.f32 1.0, %v1158_v41 }
 0x110   : > { %v1162_v8 = vpop.eup %1161  ;;  %1187 = vrcp.f32 %v571_v5  ;;  %v569_v45 = vadd.f32 1.0, %v1160_v42 }
 0x111   : > { %v1164_v47 = vpop.eup %1163  ;;  %1189 = vrcp.f32 %v553_v44  ;;  %v556_v11 = vadd.f32 1.0, %v1162_v8 }
 0x112   : > { %v1166_v49 = vpop.eup %1165  ;;  %1191 = vrcp.f32 %v569_v45  ;;  %v572_v51 = vadd.f32 1.0, %v1164_v47 }
 0x113   : > { %v1168_v53 = vpop.eup %1167  ;;  %1193 = vrcp.f32 %v556_v11  ;;  %v554_v56 = vadd.f32 1.0, %v1166_v49 }
 0x114   : > { %v1170_v14 = vpop.eup %1169  ;;  %1195 = vrcp.f32 %v572_v51  ;;  %v570_v50 = vadd.f32 1.0, %v1168_v53 }
 0x115   : > { %v1172_v59 = vpop.eup %1171  ;;  %v647_v61 = vmul.f32 %v1170_v14, %v1366_v58  ;;  %1197 = vrcp.f32 %v554_v56 }
 0x116   : > { %v1174_v17 = vpop.eup %1173  ;;  %v663_v52 = vmul.f32 %v1172_v59, %v1369_v4  ;;  %1199 = vrcp.f32 %v570_v50 }
 0x117   : > { %v1176_v62 = vpop.eup %1175  ;;  %v988_v0 = vpack.c.bf16 %v647_v61, %v647_v61  ;;  %v645_v20 = vmul.f32 %v1174_v17, %v1372_v9 }
 0x118   : > { %v1178_v1 = vpop.eup %1177  ;;  %v1004_v3 = vpack.c.bf16 %v663_v52, %v663_v52  ;;  %v661_v7 = vmul.f32 %v1176_v62, %v1376_v19 }
 0x119   : > { %v1180_v23 = vpop.eup %1179  ;;  %808 = vst.msk [vmem:[%s1410_s26 + $0x28] sm:$0xf] %vm797_vm2, %v988_v0  ;;  %v986_v58 = vpack.c.bf16 %v645_v20, %v645_v20  ;;  %v648_v10 = vmul.f32 %v1178_v1, %v1379_v21 }
 0x11a   : > { %v1182_v12 = vpop.eup %1181  ;;  %824 = vst.msk [vmem:[%s1410_s26 + $0x68] sm:$0xf] %vm797_vm2, %v1004_v3  ;;  %v1002_v4 = vpack.c.bf16 %v661_v7, %v661_v7  ;;  %v664_v54 = vmul.f32 %v1180_v23, %v1383_v28 }
 0x11b   : > { %v1184_v9 = vpop.eup %1183  ;;  %806 = vst.msk [vmem:[%s1410_s26 + $0x20] sm:$0xf] %vm797_vm2, %v986_v58  ;;  %v989_v26 = vpack.c.bf16 %v648_v10, %v648_v10  ;;  %v646_v19 = vmul.f32 %v1182_v12, %v1387_v34 }
 0x11c   : > { %v1186_v15 = vpop.eup %1185  ;;  %822 = vst.msk [vmem:[%s1410_s26 + $0x60] sm:$0xf] %vm797_vm2, %v1002_v4  ;;  %v1005_v16 = vpack.c.bf16 %v664_v54, %v664_v54  ;;  %v662_v21 = vmul.f32 %v1184_v9, %v1390_v37 }
 0x11d   : > { %v1188_v18 = vpop.eup %1187  ;;  %809 = vst.msk [vmem:[%s1410_s26 + $0x2c] sm:$0xf] %vm797_vm2, %v989_v26  ;;  %v987_v29 = vpack.c.bf16 %v646_v19, %v646_v19  ;;  %v651_v28 = vmul.f32 %v1186_v15, %v1393_v38 }
 0x11e   : > { %v1190_v57 = vpop.eup %1189  ;;  %825 = vst.msk [vmem:[%s1410_s26 + $0x6c] sm:$0xf] %vm797_vm2, %v1005_v16  ;;  %v1003_v13 = vpack.c.bf16 %v662_v21, %v662_v21  ;;  %v667_v34 = vmul.f32 %v1188_v18, %v1400_v48 }
 0x11f   : > { %v1192_v22 = vpop.eup %1191  ;;  %807 = vst.msk [vmem:[%s1410_s26 + $0x24] sm:$0xf] %vm797_vm2, %v987_v29  ;;  %v992_v32 = vpack.c.bf16 %v651_v28, %v651_v28  ;;  %v649_v37 = vmul.f32 %v1190_v57, %v1405_v55 }
 0x120   : > { %v1194_v24 = vpop.eup %1193  ;;  %823 = vst.msk [vmem:[%s1410_s26 + $0x64] sm:$0xf] %vm797_vm2, %v1003_v13  ;;  %v1008_v60 = vpack.c.bf16 %v667_v34, %v667_v34  ;;  %v665_v38 = vmul.f32 %v1192_v22, %v1417_v6 }
 0x121   : > { %v1196_v27 = vpop.eup %1195  ;;  %812 = vst.msk [vmem:[%s1410_s26 + $0x38] sm:$0xf] %vm797_vm2, %v992_v32  ;;  %v990_v48 = vpack.c.bf16 %v649_v37, %v649_v37  ;;  %v652_v30 = vmul.f32 %v1194_v24, %v1429_v25 }
 0x122   : > { %v1198_v63 = vpop.eup %1197  ;;  %828 = vst.msk [vmem:[%s1410_s26 + $0x78] sm:$0xf] %vm797_vm2, %v1008_v60  ;;  %v1006_v55 = vpack.c.bf16 %v665_v38, %v665_v38  ;;  %v668_v31 = vmul.f32 %v1196_v27, %v1439_v40 }
 0x123   : > { %v1200_v33 = vpop.eup %1199  ;;  %810 = vst.msk [vmem:[%s1410_s26 + $0x30] sm:$0xf] %vm797_vm2, %v990_v48  ;;  %v993_v6 = vpack.c.bf16 %v652_v30, %v652_v30  ;;  %v650_v35 = vmul.f32 %v1198_v63, %v1445_v43 }
 0x124   : > { %826 = vst.msk [vmem:[%s1410_s26 + $0x70] sm:$0xf] %vm797_vm2, %v1006_v55  ;;  %v1009_v36 = vpack.c.bf16 %v668_v31, %v668_v31  ;;  %v666_v2 = vmul.f32 %v1200_v33, %v1451_v46 }
 0x125   : > { %813 = vst.msk [vmem:[%s1410_s26 + $0x3c] sm:$0xf] %vm797_vm2, %v993_v6  ;;  %v991_v25 = vpack.c.bf16 %v650_v35, %v650_v35 }
 0x126   : > { %829 = vst.msk [vmem:[%s1410_s26 + $0x7c] sm:$0xf] %vm797_vm2, %v1009_v36  ;;  %v1007_v39 = vpack.c.bf16 %v666_v2, %v666_v2 }
 0x127   : > { %811 = vst.msk [vmem:[%s1410_s26 + $0x34] sm:$0xf] %vm797_vm2, %v991_v25 }
 0x128   : > { %827 = vst.msk [vmem:[%s1410_s26 + $0x74] sm:$0xf] %vm797_vm2, %v1007_v39 }
 0x129 PF: > { %s13_s12 = sadd.s32 1, %s1207_s12  }
 0x12a   : > { %p10_p4 = scmp.ge.s32.totalorder %s13_s12, 4  }
 0x12c   :  { %12 = sbr.rel (!%p10_p4) target bundleno = 1 (0x1), region = 62 }

</bundles_post_ra>
